<compile_context>
chip_gen: v5e
topology: v5e:2x2
jax: 0.10.0
libtpu: 0.0.40
codegen_flags: <defaults>
</compile_context>

<pallas_src>
import jax
import jax.numpy as jnp
from jax import lax
from jax.experimental import pallas as pl
from jax.experimental.pallas import tpu as pltpu


_DEFAULT_TILE_B = 2048            # amortizes ~0.35 us per-grid-step overhead
_MIN_TILE_B = 8                   # sublane granularity
_FUSE_TABLE_BYTES_CAP = 4 << 20   # fuse gather only if table comfortably fits VMEM
_FUSE_ONEHOT_BYTES_CAP = 4 << 20  # cap on the in-kernel (tile_b, U) one-hot temp
_VMEM_LIMIT_BYTES = 32 << 20      # safe on v5e(128M phys)/v6e(128M)/v7x(64M)


def _round_up(x, m):
    return ((x + m - 1) // m) * m


def _num_tensorcores():
    """TensorCores per chip (v7x has 2; v5e/v6e have 1)."""
    try:
        kind = jax.devices()[0].device_kind.lower()
    except Exception:  # pragma: no cover - defensive
        return 1
    return 2 if "v7" in kind else 1


def prepare_params(emb_table, lin_w, lin_b, *, compute_dtype=jnp.bfloat16):
    """Hoist per-call dtype casts out of the forward pass (do this once)."""
    return (emb_table.astype(compute_dtype),
            lin_w.astype(compute_dtype),
            lin_b.astype(jnp.float32))


# ---------------------------------------------------------------------------
# Kernels
# ---------------------------------------------------------------------------

def _fused_gather_relu_linear_kernel(idx_ref, table_ref, w_ref, b_ref, out_ref):
    """one-hot gather (MXU) -> ReLU -> linear (MXU) for one batch tile.

    idx_ref  : (tile_b, 1) int32 user ids
    table_ref: (U, E) compute dtype, resident (block (0,0) every step)
    w_ref    : (E, F) compute dtype, resident
    b_ref    : (1, F) f32, resident
    out_ref  : (tile_b, F) f32
    """
    tile_b = idx_ref.shape[0]
    user_count = table_ref.shape[0]
    idx = idx_ref[...]                                                  # (tile_b, 1)
    u_iota = lax.broadcasted_iota(jnp.int32, (tile_b, user_count), 1)
    onehot = (u_iota == idx).astype(table_ref.dtype)                    # (tile_b, U)
    # Gather == one-hot matmul on the (otherwise ~2%-utilized) MXU; exact.
    emb = jnp.dot(onehot, table_ref[...], preferred_element_type=jnp.float32)
    x = jnp.maximum(emb, 0.0).astype(w_ref.dtype)                       # ReLU
    y = jnp.dot(x, w_ref[...], preferred_element_type=jnp.float32)      # (tile_b, F)
    out_ref[...] = (y + b_ref[...]).astype(out_ref.dtype)


def _relu_linear_kernel(x_ref, w_ref, b_ref, out_ref):
    """Fallback (gather done outside): ReLU -> linear for one batch tile."""
    x = jnp.maximum(x_ref[...], 0)
    y = jnp.dot(x, w_ref[...], preferred_element_type=jnp.float32)
    out_ref[...] = (y + b_ref[...]).astype(out_ref.dtype)


# ---------------------------------------------------------------------------
# Forward wrapper
# ---------------------------------------------------------------------------

def user_embeddings_forward(user_idx, emb_table, lin_w, lin_b, *,
                            tile_b=None, compute_dtype=jnp.bfloat16,
                            fuse_gather=None):
    """Pallas forward pass of UserEmbeddings.

    Args:
      user_idx : (B,) or (B, 1) int user indices.
      emb_table: (user_count, E) embedding table (nn.Embedding.weight).
      lin_w    : (E, F) linear weight (transpose of PyTorch's (F, E)).
      lin_b    : (F,) linear bias.

    Returns:
      user_idx.shape + (F,) float32 (e.g. (B, 1, F) for a (B, 1) index tensor).
    """
    idx = user_idx.reshape(-1).astype(jnp.int32)
    B = idx.shape[0]
    user_count, emb_dim = emb_table.shape
    feature_dim = lin_w.shape[1]
    itemsize = jnp.dtype(compute_dtype).itemsize

    # No-ops if params were pre-cast with prepare_params().
    table_c = emb_table.astype(compute_dtype)
    w_c = lin_w.astype(compute_dtype)
    bias2d = lin_b.reshape(1, feature_dim).astype(jnp.float32)

    if fuse_gather is None:
        fuse_gather = (user_count * emb_dim * itemsize <= _FUSE_TABLE_BYTES_CAP
                       and user_count <= 8192)

    # ---- batch tile selection -------------------------------------------
    if tile_b is None:
        tile_b = _DEFAULT_TILE_B
        if fuse_gather:
            # Keep the in-kernel (tile_b, U) one-hot temporary modest.
            tile_b = min(tile_b, max(256, _FUSE_ONEHOT_BYTES_CAP
                                     // max(1, user_count * itemsize)))
    # v7x megacore: keep >= num_cores grid steps so "parallel" can shard.
    n_tc = _num_tensorcores()
    if n_tc > 1 and B >= n_tc * 512:
        tile_b = min(tile_b, _round_up(pl.cdiv(B, n_tc), _MIN_TILE_B))
    tile_b = max(_MIN_TILE_B, _round_up(min(tile_b, B), _MIN_TILE_B))
    B_pad = _round_up(B, tile_b)

    # Clamp indices (PyTorch would raise on OOB; clamping keeps the lookup safe)
    # and pad the batch to a whole number of tiles (padded rows reuse id 0 and
    # are sliced off at the end).
    idx_safe = jnp.clip(idx, 0, user_count - 1)
    if B_pad != B:
        idx_safe = jnp.concatenate(
            [idx_safe, jnp.zeros((B_pad - B,), jnp.int32)], axis=0)

    compiler_params = pltpu.CompilerParams(
        dimension_semantics=("parallel",),
        vmem_limit_bytes=_VMEM_LIMIT_BYTES,
    )

    if fuse_gather:
        idx2d = idx_safe.reshape(B_pad, 1)
        cost = pl.CostEstimate(
            flops=2 * B_pad * user_count * emb_dim
                  + 2 * B_pad * emb_dim * feature_dim,
            transcendentals=0,
            bytes_accessed=(B_pad * 4
                            + user_count * emb_dim * itemsize
                            + emb_dim * feature_dim * itemsize
                            + feature_dim * 4
                            + B_pad * feature_dim * 4),
        )
        grid_spec = pltpu.PrefetchScalarGridSpec(
            num_scalar_prefetch=0,
            grid=(B_pad // tile_b,),
            in_specs=[
                # Per-tile user ids.
                pl.BlockSpec((tile_b, 1), lambda i: (i, 0)),
                # Resident blocks: same block index every step -> DMA'd once.
                # TODO(synk): single-buffer (pipeline_mode=pl.Buffered(1)) if
                # U/E/F ever grow enough for the duplicate buffer to matter.
                pl.BlockSpec((user_count, emb_dim), lambda i: (0, 0)),
                pl.BlockSpec((emb_dim, feature_dim), lambda i: (0, 0)),
                pl.BlockSpec((1, feature_dim), lambda i: (0, 0)),
            ],
            out_specs=pl.BlockSpec((tile_b, feature_dim), lambda i: (i, 0)),
        )
        out = pl.pallas_call(
            _fused_gather_relu_linear_kernel,
            out_shape=jax.ShapeDtypeStruct((B_pad, feature_dim), jnp.float32),
            grid_spec=grid_spec,
            compiler_params=compiler_params,
            cost_estimate=cost,
        )(idx2d, table_c, w_c, bias2d)
    else:
        # Fallback for large tables: XLA gather on the already-bf16 table so
        # the (B_pad, E) HBM intermediate is written in the narrow dtype.
        x = jnp.take(table_c, idx_safe, axis=0)                   # (B_pad, E)
        cost = pl.CostEstimate(
            flops=2 * B_pad * emb_dim * feature_dim,
            transcendentals=0,
            bytes_accessed=(B_pad * emb_dim * itemsize
                            + emb_dim * feature_dim * itemsize
                            + feature_dim * 4
                            + B_pad * feature_dim * 4),
        )
        grid_spec = pltpu.PrefetchScalarGridSpec(
            num_scalar_prefetch=0,
            grid=(B_pad // tile_b,),
            in_specs=[
                pl.BlockSpec((tile_b, emb_dim), lambda i: (i, 0)),
                pl.BlockSpec((emb_dim, feature_dim), lambda i: (0, 0)),
                pl.BlockSpec((1, feature_dim), lambda i: (0, 0)),
            ],
            out_specs=pl.BlockSpec((tile_b, feature_dim), lambda i: (i, 0)),
        )
        out = pl.pallas_call(
            _relu_linear_kernel,
            out_shape=jax.ShapeDtypeStruct((B_pad, feature_dim), jnp.float32),
            grid_spec=grid_spec,
            compiler_params=compiler_params,
            cost_estimate=cost,
        )(x, w_c, bias2d)

    return out[:B].reshape(tuple(user_idx.shape) + (feature_dim,))


# ---------------------------------------------------------------------------
# Pure-JAX reference (matches the PyTorch forward)
# ---------------------------------------------------------------------------

def user_embeddings_reference(user_idx, emb_table, lin_w, lin_b,
                              compute_dtype=jnp.float32):
    idx = user_idx.reshape(-1).astype(jnp.int32)
    u = jnp.take(emb_table, idx, axis=0).astype(compute_dtype)
    u = jnp.maximum(u, 0)
    y = jnp.dot(u, lin_w.astype(compute_dtype),
                preferred_element_type=jnp.float32)
    y = y + lin_b.reshape(1, -1).astype(jnp.float32)
    return y.reshape(tuple(user_idx.shape) + (lin_w.shape[1],))


if __name__ == "__main__":
    # Small, module-consistent shapes.
    dict_args = {"user_embdim": 32, "user_count": 64, "feature_dim": 16}
    batch_size = 4

    E = dict_args["user_embdim"]
    U = dict_args["user_count"]
    F = dict_args["feature_dim"]

    key = jax.random.PRNGKey(0)
    k_emb, k_w, k_b, k_idx = jax.random.split(key, 4)

    # Deterministic synthetic parameters (shapes from the module's __init__).
    emb_table = jax.random.normal(k_emb, (U, E), dtype=jnp.float32)   # nn.Embedding weight
    # nn.Linear(E, F): weight (F, E); store its transpose (E, F) for y = x @ W^T + b.
    lin_w = (jax.random.uniform(k_w, (F, E), dtype=jnp.float32,
                                minval=-1.0, maxval=1.0) / jnp.sqrt(E)).T  # (E, F)
    lin_b = jax.random.uniform(k_b, (F,), dtype=jnp.float32,
                               minval=-1.0, maxval=1.0) / jnp.sqrt(E)

    # user_idx: batch_size x 1 (as in the PyTorch docstring).
    user_idx = jax.random.randint(k_idx, (batch_size, 1), 0, U, dtype=jnp.int32)

    compute_dtype = jnp.bfloat16
    table_c, w_c, b_c = prepare_params(emb_table, lin_w, lin_b,
                                       compute_dtype=compute_dtype)

    # Fused in-kernel gather path (default for small tables).
    out_fused = jax.block_until_ready(
        user_embeddings_forward(user_idx, table_c, w_c, b_c,
                                compute_dtype=compute_dtype))
    # Large-table fallback path (XLA gather + relu/linear kernel).
    out_unfused = jax.block_until_ready(
        user_embeddings_forward(user_idx, table_c, w_c, b_c,
                                compute_dtype=compute_dtype, fuse_gather=False))

    ref = user_embeddings_reference(user_idx, emb_table, lin_w, lin_b,
                                    compute_dtype=compute_dtype)
    ref_f32 = user_embeddings_reference(user_idx, emb_table, lin_w, lin_b)

    assert out_fused.shape == (batch_size, 1, F), out_fused.shape
    assert out_unfused.shape == (batch_size, 1, F), out_unfused.shape
    assert jnp.allclose(out_fused, ref, atol=1e-3, rtol=1e-3), "fused mismatch"
    assert jnp.allclose(out_unfused, ref, atol=1e-3, rtol=1e-3), "fallback mismatch"
    # Loose check against pure-f32 PyTorch-equivalent numerics (bf16 compute).
    assert jnp.allclose(out_fused, ref_f32, atol=5e-2, rtol=5e-2), "f32 mismatch"

    print("KERNEL_OK")
</pallas_src>

<mosaic_0001>
module attributes {stable_mosaic.version = 11 : i64} {
  func.func @_fused_gather_relu_linear_kernel(%arg0: i32, %arg1: memref<8x1xi32, #tpu.memory_space<vmem>>, %arg2: memref<64x32xbf16, #tpu.memory_space<vmem>>, %arg3: memref<32x16xbf16, #tpu.memory_space<vmem>>, %arg4: memref<1x16xf32, #tpu.memory_space<vmem>>, %arg5: memref<8x16xf32, #tpu.memory_space<vmem>>) attributes {dimension_semantics = [#tpu.dimension_semantics<parallel>], iteration_bounds = array<i64: 1>, scalar_prefetch = 0 : i64, scratch_operands = 0 : i64, tpu.core_type = #tpu.core_type<tc>, window_params = [{transform_indices = @transform_0, window_bounds = array<i64: 8, 1>}, {pipeline_mode = #tpu.pipeline_mode<synchronous>, transform_indices = @transform_1, window_bounds = array<i64: 64, 32>}, {pipeline_mode = #tpu.pipeline_mode<synchronous>, transform_indices = @transform_2, window_bounds = array<i64: 32, 16>}, {pipeline_mode = #tpu.pipeline_mode<synchronous>, transform_indices = @transform_3, window_bounds = array<i64: 1, 16>}, {transform_indices = @transform_4, window_bounds = array<i64: 8, 16>}]} {
    %c0 = arith.constant 0 : index
    %c0_0 = arith.constant 0 : index
    %0 = vector.load %arg1[%c0, %c0_0] : memref<8x1xi32, #tpu.memory_space<vmem>>, vector<8x1xi32>
    %1 = tpu.iota {dimensions = array<i32: 1>} : vector<8x64xi32>
    %2 = vector.broadcast %0 : vector<8x1xi32> to vector<8x64xi32>
    %3 = arith.cmpi eq, %1, %2 : vector<8x64xi32>
    %4 = arith.extui %3 : vector<8x64xi1> to vector<8x64xi32>
    %5 = arith.sitofp %4 : vector<8x64xi32> to vector<8x64xf32>
    %6 = arith.truncf %5 : vector<8x64xf32> to vector<8x64xbf16>
    %c0_1 = arith.constant 0 : index
    %c0_2 = arith.constant 0 : index
    %7 = vector.load %arg2[%c0_1, %c0_2] : memref<64x32xbf16, #tpu.memory_space<vmem>>, vector<64x32xbf16>
    %cst = arith.constant dense<0.000000e+00> : vector<8x32xf32>
    %8 = tpu.matmul %6, %7, %cst {dimension_numbers = #tpu.dot_dimension_numbers<[1], [0], [0], [1], [0, 0, 1, 1], [], []>} : vector<8x64xbf16>, vector<64x32xbf16>, vector<8x32xf32> -> vector<8x32xf32>
    %cst_3 = arith.constant 0.000000e+00 : f32
    %9 = vector.broadcast %cst_3 : f32 to vector<8x32xf32>
    %10 = arith.maximumf %8, %9 : vector<8x32xf32>
    %11 = arith.truncf %10 : vector<8x32xf32> to vector<8x32xbf16>
    %c0_4 = arith.constant 0 : index
    %c0_5 = arith.constant 0 : index
    %12 = vector.load %arg3[%c0_4, %c0_5] : memref<32x16xbf16, #tpu.memory_space<vmem>>, vector<32x16xbf16>
    %cst_6 = arith.constant dense<0.000000e+00> : vector<8x16xf32>
    %13 = tpu.matmul %11, %12, %cst_6 {dimension_numbers = #tpu.dot_dimension_numbers<[1], [0], [0], [1], [0, 0, 1, 1], [], []>} : vector<8x32xbf16>, vector<32x16xbf16>, vector<8x16xf32> -> vector<8x16xf32>
    %c0_7 = arith.constant 0 : index
    %c0_8 = arith.constant 0 : index
    %14 = vector.load %arg4[%c0_7, %c0_8] : memref<1x16xf32, #tpu.memory_space<vmem>>, vector<1x16xf32>
    %15 = vector.broadcast %14 : vector<1x16xf32> to vector<8x16xf32>
    %16 = arith.addf %13, %15 : vector<8x16xf32>
    %c0_9 = arith.constant 0 : index
    %c0_10 = arith.constant 0 : index
    %17 = vector.load %arg5[%c0_9, %c0_10] : memref<8x16xf32, #tpu.memory_space<vmem>>, vector<8x16xf32>
    tpu.vector_store %arg5[%c0_9, %c0_10], %16 {strides = array<i32>} : memref<8x16xf32, #tpu.memory_space<vmem>>, vector<8x16xf32>,
    return
  }
  func.func @transform_0(%arg0: i32) -> (i32, i32) {
    %c0_i32 = arith.constant 0 : i32
    %c0_i32_0 = arith.constant 0 : i32
    return %arg0, %c0_i32 : i32, i32
  }
  func.func @transform_1(%arg0: i32) -> (i32, i32) {
    %c0_i32 = arith.constant 0 : i32
    %c0_i32_0 = arith.constant 0 : i32
    %c0_i32_1 = arith.constant 0 : i32
    return %c0_i32, %c0_i32_0 : i32, i32
  }
  func.func @transform_2(%arg0: i32) -> (i32, i32) {
    %c0_i32 = arith.constant 0 : i32
    %c0_i32_0 = arith.constant 0 : i32
    %c0_i32_1 = arith.constant 0 : i32
    return %c0_i32, %c0_i32_0 : i32, i32
  }
  func.func @transform_3(%arg0: i32) -> (i32, i32) {
    %c0_i32 = arith.constant 0 : i32
    %c0_i32_0 = arith.constant 0 : i32
    %c0_i32_1 = arith.constant 0 : i32
    return %c0_i32, %c0_i32_0 : i32, i32
  }
  func.func @transform_4(%arg0: i32) -> (i32, i32) {
    %c0_i32 = arith.constant 0 : i32
    %c0_i32_0 = arith.constant 0 : i32
    return %arg0, %c0_i32 : i32, i32
  }
}

</mosaic_0001>

<bundles_post_ra>
// kernel: tpu_custom_call.1
= control target key start
LH: loop header
LB: loop body
LE: loop exit
PB: predicated region body
PF: predicated region fallthrough
CT: control target
= control target key end

     0   :  { %v199_v2 = vmov 0   ;;  %s254_s0 = inlined_call_operand.vmem [shape: s32[8,1], index: 0, kind: input, shape index: {}]   ;;  %s255_s1 = inlined_call_operand.vmem [shape: bf16[64,32], index: 1, kind: input, shape index: {}]   ;;  %s256_s2 = inlined_call_operand.vmem [shape: bf16[32,16], index: 2, kind: input, shape index: {}]   ;;  %s257_s3 = inlined_call_operand.vmem [shape: f32[1,16], index: 3, kind: input, shape index: {}]   ;;  %s258_s4 = inlined_call_operand.hbm [shape: f32[8,16], index: 4, kind: output, shape index: {}]  }
   0x1   :  { %v19_v0 = vld [vmem:[%s254_s0] sm:$0xff]  ;;  %v165_v1 = vld [vmem:[%s255_s1 + $0x18] sm:$0xff]  ;;  %171 = vset.pattern.permute.xlu0 %v199_v2 }
   0x2   :  { %9 = vsyncpa [#allocation3], 0  ;;  %23 = vperm.xlu0 %171, %v19_v0   ;;  %69 = vmatpush.bf16.msra.mxu0 %v165_v1  ;;  %v164_v3 = vld [vmem:[%s255_s1 + $0x10] sm:$0xff]  ;;  %v163_v4 = vld [vmem:[%s255_s1 + $0x8] sm:$0xff]  ;;  %v20_v7 = vlaneseq  ;;  %v200_v10 = vmov 0.0   ;;  %vm61_vm1 = vcmask 523264  }
   0x3   :  { %v162_v5 = vld [vmem:[%s255_s1] sm:$0xff]  ;;  %v167_v6 = vld [vmem:[%s256_s2 + $0x8] sm:$0xff]  ;;  %vm100_vm2 = vcmask 261120   ;;  %s201_s29 = smov [#allocation2]   ;;  %s126_s7 = sshll.u32 %s258_s4, 4  ;;  %vm117_vm3 = vcmask 130048   ;;  %s127_s7 = int_to_ptr.hbm [resolvable:$true] %s126_s7 }
   0x4   :  { %110 = vmatpush.bf16.msra.mxu1 %v167_v6  ;;  %v21_v8 = vand.u32 127, %v20_v7  ;;  %v166_v13 = vld [vmem:[%s256_s2] sm:$0xff]  ;;  %s124_s30 = sshll.u32 %s201_s29, 4  ;;  %s125_s30 = int_to_ptr.vmem [resolvable:$true] %s124_s30 }
   0x5   :  { %v172_v18 = vld [vmem:[%s257_s3] ss:$0 sm:$0xff] }
   0x6   :  { %70 = vmatpush.bf16.msra.mxu0 %v164_v3 }
   0x8   :  { %111 = vmatpush.bf16.msra.mxu1 %v166_v13 }
   0xa   :  { %71 = vmatpush.bf16.msra.mxu0 %v163_v4 }
   0xe   :  { %72 = vmatpush.bf16.msra.mxu0 %v162_v5 }
  0x74   :  { %v24_v9 = vpop.permute.xlu0 %23 }
  0x75   :  { %vm25_vm0 = vcmp.eq.s32.totalorder %v21_v8, %v24_v9 }
  0x76   :  { %v135_v11 = vsel %vm25_vm0, 1.0, %v200_v10 }
  0x77   :  { %v28_v12 = vpack.c.bf16 %v135_v11, %v135_v11 }
  0x79   :  { %152 = vmatmul.msk.bf16.vlgmr.msra.gmra.mxu0 %vm61_vm1, %v28_v12 }
  0xf6   :  { %v74_v14 = vpop.f32.mrf.mxu0 }
  0xf7   :  { %v78_v15 = vmax.f32 %v74_v14, 0.0 }
  0xf9   :  { %v79_v16 = vpack.c.bf16 %v78_v15, %v78_v15 }
  0xfb   :  { %161 = vmatmul.msk.bf16.vlgmr.msra.gmra.mxu1 %vm100_vm2, %v79_v16 }
  0xfe   :  { %v76_v17 = vpop.f32.mrf.mxu0 }
 0x178   :  { %v113_v19 = vpop.f32.mrf.mxu1 }
 0x179   :  { %v114_v20 = vadd.f32 %v172_v18, %v113_v19 }
 0x17b   :  { %118 = vst.msk [vmem:[#allocation2] sm:$0xff] %vm117_vm3, %v114_v20 }
 0x17c   :  { %129 = dma.vmem_to_hbm [thread:$0]  %s125_s30, 128, %s127_s7, [#allocation3]  }
 0x180   :  { %v115_v21 = vpop.f32.mrf.mxu1 }
 0x181   :  { %197 = dma.done.wait [#allocation3], 128  }
 0x182   :  { %198 = vsyncadd [#allocation3], 4294967168 }
 0x183   :  { %134 = vsyncpa [#allocation3], 1 }

</bundles_post_ra>
